<compile_context>
chip_gen: v5e
topology: v5e:2x2
jax: 0.10.0
libtpu: 0.0.40
codegen_flags: <defaults>
</compile_context>

<pallas_src>
import jax
import jax.numpy as jnp
from jax.experimental import pallas as pl
from jax.experimental.pallas import tpu as pltpu


# ----------------------------- configuration -------------------------------
# The original file leaves these as None; pick small, consistent values.
FEATURES_NUM = 4
SLICE_LENGTH = 8
FC_LAYERS = [32, 32, 16]          # fc_layers[0] = fc_input out, rest = hidden
BATCH = 512                       # batched so the MXU / grid actually gets used

D_IN = FEATURES_NUM * SLICE_LENGTH   # 32
H1 = FC_LAYERS[1]                    # width after folding fc_input into fc[0]
H2 = FC_LAYERS[2]

TB = 256                             # batch rows per grid step (multiple of 8)
LANES = 128                          # lane width for the lane-dense output slab


def _ceil8(n):
    return (n + 7) // 8 * 8


# Packed weight-slab layout (rows; all sub-blocks start on 8-row boundaries).
ROW_W01 = 0                           # folded (fc_input @ fc1) weight: D_IN rows
ROW_B01 = _ceil8(ROW_W01 + D_IN)      # folded bias: 1 row
ROW_W2 = ROW_B01 + 8                  # second hidden weight: H1 rows
ROW_B2 = _ceil8(ROW_W2 + H1)          # second hidden bias: 1 row
ROW_WC = ROW_B2 + 8                   # cls weight row (cols 0:H2) + cls bias (col H2)
SLAB_ROWS = ROW_WC + 8
SLAB_COLS = LANES


# ------------------------------- kernel ------------------------------------
def mlp_kernel(x_ref, slab_ref, o_ref):
    x = x_ref[...]                                           # (TB, D_IN)

    # Static slices into the resident weight slab (8-row aligned -> cheap).
    w01 = slab_ref[ROW_W01:ROW_W01 + D_IN, 0:H1]             # (D_IN, H1) folded
    b01 = slab_ref[ROW_B01:ROW_B01 + 1, 0:H1]                # (1, H1)
    w2 = slab_ref[ROW_W2:ROW_W2 + H1, 0:H2]                  # (H1, H2)
    b2 = slab_ref[ROW_B2:ROW_B2 + 1, 0:H2]                   # (1, H2)
    wc = slab_ref[ROW_WC:ROW_WC + 1, 0:H2]                   # (1, H2)  cls weight
    bc = slab_ref[ROW_WC:ROW_WC + 1, H2:H2 + 1]              # (1, 1)   cls bias

    # Folded (fc_input -> fc1) Linear, then Dropout(identity) -> ReLU.
    h = jnp.dot(x, w01, preferred_element_type=jnp.float32) + b01
    h = jnp.maximum(h, 0.0)

    # Second hidden Linear -> Dropout(identity) -> ReLU.
    h = jnp.dot(h, w2, preferred_element_type=jnp.float32) + b2
    h = jnp.maximum(h, 0.0)

    # cls: N=1 Linear as VPU multiply + cross-lane reduce (no MXU push wasted).
    logits = jnp.sum(h * wc, axis=-1, keepdims=True) + bc    # (TB, 1)

    # Lane-dense store: broadcast across 128 lanes (unmasked vst); wrapper
    # slices column 0 back out.
    o_ref[...] = jnp.broadcast_to(logits, o_ref.shape)


# ------------------------------ wrapper -------------------------------------
def pack_params(params):
    """Fold fc_input into fc[0] and pack all weights/biases into one f32 slab."""
    (w_in, b_in), (w_h1, b_h1), (w_h2, b_h2), (w_cls, b_cls) = params
    w01 = w_in @ w_h1                       # (D_IN, H1)
    b01 = b_in @ w_h1 + b_h1                # (1, H1)

    slab = jnp.zeros((SLAB_ROWS, SLAB_COLS), jnp.float32)
    slab = slab.at[ROW_W01:ROW_W01 + D_IN, 0:H1].set(w01)
    slab = slab.at[ROW_B01:ROW_B01 + 1, 0:H1].set(b01)
    slab = slab.at[ROW_W2:ROW_W2 + H1, 0:H2].set(w_h2)
    slab = slab.at[ROW_B2:ROW_B2 + 1, 0:H2].set(b_h2)
    slab = slab.at[ROW_WC:ROW_WC + 1, 0:H2].set(w_cls.T)     # (1, H2)
    slab = slab.at[ROW_WC, H2].set(b_cls[0, 0])
    return slab


def net_forward(x, params):
    """x: (B, features_num, slicelength) float32. Returns (B, 1) float32."""
    b = x.shape[0]
    x_flat = x.reshape(b, -1).astype(jnp.float32)   # == x.contiguous().view(B, -1)
    assert x_flat.shape[1] == D_IN

    slab = pack_params(params)

    # Pad batch to a multiple of the row tile.
    b_pad = -(-b // TB) * TB
    if b_pad != b:
        x_flat = jnp.pad(x_flat, ((0, b_pad - b), (0, 0)))

    out_slab = pl.pallas_call(
        mlp_kernel,
        out_shape=jax.ShapeDtypeStruct((b_pad, LANES), jnp.float32),
        grid=(b_pad // TB,),
        in_specs=[
            # Batch tile of the flattened input.
            pl.BlockSpec((TB, D_IN), lambda i: (i, 0)),
            # Single packed weight slab, constant block index -> stays resident.
            pl.BlockSpec((SLAB_ROWS, SLAB_COLS), lambda i: (0, 0)),
        ],
        out_specs=pl.BlockSpec((TB, LANES), lambda i: (i, 0)),
        compiler_params=pltpu.CompilerParams(
            dimension_semantics=("parallel",)),   # batch axis -> both TCs on v7x
    )(x_flat, slab)

    return out_slab[:b, :1]


# ---------------------------- param construction ---------------------------
def init_linear(key, fan_in, fan_out):
    """Deterministic init; weight stored as (in, out), bias as (1, out)."""
    kw, kb = jax.random.split(key)
    bound = 1.0 / jnp.sqrt(fan_in)
    w_t = jax.random.uniform(kw, (fan_in, fan_out), jnp.float32, -bound, bound)
    bias = jax.random.uniform(kb, (1, fan_out), jnp.float32, -bound, bound)
    return w_t, bias


def make_params(key):
    k1, k2, k3, k4 = jax.random.split(key, 4)
    p_in = init_linear(k1, D_IN, FC_LAYERS[0])             # fc_input
    p_h1 = init_linear(k2, FC_LAYERS[0], FC_LAYERS[1])     # fc[0]
    p_h2 = init_linear(k3, FC_LAYERS[1], FC_LAYERS[2])     # fc[1]
    p_cls = init_linear(k4, FC_LAYERS[2], 1)               # cls
    return p_in, p_h1, p_h2, p_cls


def net_forward_ref(x, params):
    """Pure-JAX reference matching the original (unfolded) module exactly."""
    (w_in, b_in), (w_h1, b_h1), (w_h2, b_h2), (w_cls, b_cls) = params
    h = x.reshape(x.shape[0], -1)
    h = h @ w_in + b_in                              # fc_input (no activation)
    h = jnp.maximum(h @ w_h1 + b_h1, 0.0)            # fc block 1 (dropout=eval)
    h = jnp.maximum(h @ w_h2 + b_h2, 0.0)            # fc block 2 (dropout=eval)
    return h @ w_cls + b_cls                         # cls


# --------------------------------- main -------------------------------------
if __name__ == "__main__":
    key = jax.random.PRNGKey(0)
    kx, kp = jax.random.split(key)

    x = jax.random.normal(kx, (BATCH, FEATURES_NUM, SLICE_LENGTH), jnp.float32)
    params = make_params(kp)

    out = net_forward(x, params)
    out = jax.block_until_ready(out)

    ref = net_forward_ref(x, params)
    assert out.shape == (BATCH, 1)
    # Folding fc_input into fc[0] is mathematically identical but not bit-identical.
    assert jnp.allclose(out, ref, atol=1e-4, rtol=1e-4), \
        float(jnp.max(jnp.abs(out - ref)))

    print("KERNEL_OK")
</pallas_src>

<mosaic_0001>
module attributes {stable_mosaic.version = 11 : i64} {
  func.func @mlp_kernel(%arg0: i32, %arg1: memref<256x32xf32, #tpu.memory_space<vmem>>, %arg2: memref<88x128xf32, #tpu.memory_space<vmem>>, %arg3: memref<256x128xf32, #tpu.memory_space<vmem>>) attributes {dimension_semantics = [#tpu.dimension_semantics<parallel>], iteration_bounds = array<i64: 2>, scalar_prefetch = 0 : i64, scratch_operands = 0 : i64, tpu.core_type = #tpu.core_type<tc>, window_params = [{transform_indices = @transform_0, window_bounds = array<i64: 256, 32>}, {pipeline_mode = #tpu.pipeline_mode<synchronous>, transform_indices = @transform_1, window_bounds = array<i64: 88, 128>}, {transform_indices = @transform_2, window_bounds = array<i64: 256, 128>}]} {
    %c0 = arith.constant 0 : index
    %c0_0 = arith.constant 0 : index
    %0 = vector.load %arg1[%c0, %c0_0] : memref<256x32xf32, #tpu.memory_space<vmem>>, vector<256x32xf32>
    %c0_1 = arith.constant 0 : index
    %c0_2 = arith.constant 0 : index
    %1 = vector.load %arg2[%c0_1, %c0_2] : memref<88x128xf32, #tpu.memory_space<vmem>>, vector<32x32xf32>
    %c32 = arith.constant 32 : index
    %c0_3 = arith.constant 0 : index
    %2 = vector.load %arg2[%c32, %c0_3] : memref<88x128xf32, #tpu.memory_space<vmem>>, vector<1x32xf32>
    %c40 = arith.constant 40 : index
    %c0_4 = arith.constant 0 : index
    %3 = vector.load %arg2[%c40, %c0_4] : memref<88x128xf32, #tpu.memory_space<vmem>>, vector<32x16xf32>
    %c72 = arith.constant 72 : index
    %c0_5 = arith.constant 0 : index
    %4 = vector.load %arg2[%c72, %c0_5] : memref<88x128xf32, #tpu.memory_space<vmem>>, vector<1x16xf32>
    %c80 = arith.constant 80 : index
    %c0_6 = arith.constant 0 : index
    %5 = vector.load %arg2[%c80, %c0_6] : memref<88x128xf32, #tpu.memory_space<vmem>>, vector<1x16xf32>
    %c80_7 = arith.constant 80 : index
    %c16 = arith.constant 16 : index
    %6 = vector.load %arg2[%c80_7, %c16] : memref<88x128xf32, #tpu.memory_space<vmem>>, vector<1x1xf32>
    %cst = arith.constant dense<0.000000e+00> : vector<256x32xf32>
    %7 = tpu.matmul %0, %1, %cst {dimension_numbers = #tpu.dot_dimension_numbers<[1], [0], [0], [1], [0, 0, 1, 1], [], []>} : vector<256x32xf32>, vector<32x32xf32>, vector<256x32xf32> -> vector<256x32xf32>
    %8 = vector.broadcast %2 : vector<1x32xf32> to vector<256x32xf32>
    %9 = arith.addf %7, %8 : vector<256x32xf32>
    %cst_8 = arith.constant 0.000000e+00 : f32
    %10 = vector.broadcast %cst_8 : f32 to vector<256x32xf32>
    %11 = arith.maximumf %9, %10 : vector<256x32xf32>
    %cst_9 = arith.constant dense<0.000000e+00> : vector<256x16xf32>
    %12 = tpu.matmul %11, %3, %cst_9 {dimension_numbers = #tpu.dot_dimension_numbers<[1], [0], [0], [1], [0, 0, 1, 1], [], []>} : vector<256x32xf32>, vector<32x16xf32>, vector<256x16xf32> -> vector<256x16xf32>
    %13 = vector.broadcast %4 : vector<1x16xf32> to vector<256x16xf32>
    %14 = arith.addf %12, %13 : vector<256x16xf32>
    %cst_10 = arith.constant 0.000000e+00 : f32
    %15 = vector.broadcast %cst_10 : f32 to vector<256x16xf32>
    %16 = arith.maximumf %14, %15 : vector<256x16xf32>
    %17 = vector.broadcast %5 : vector<1x16xf32> to vector<256x16xf32>
    %18 = arith.mulf %16, %17 : vector<256x16xf32>
    %cst_11 = arith.constant dense<0.000000e+00> : vector<256xf32>
    %19 = vector.multi_reduction <add>, %18, %cst_11 [1] : vector<256x16xf32> to vector<256xf32>
    %20 = vector.shape_cast %19 : vector<256xf32> to vector<256x1xf32>
    %21 = vector.broadcast %6 : vector<1x1xf32> to vector<256x1xf32>
    %22 = arith.addf %20, %21 : vector<256x1xf32>
    %23 = vector.shape_cast %22 : vector<256x1xf32> to vector<256x1xf32>
    %24 = vector.broadcast %23 : vector<256x1xf32> to vector<256x128xf32>
    %c0_12 = arith.constant 0 : index
    %c0_13 = arith.constant 0 : index
    %25 = vector.load %arg3[%c0_12, %c0_13] : memref<256x128xf32, #tpu.memory_space<vmem>>, vector<256x128xf32>
    tpu.vector_store %arg3[%c0_12, %c0_13], %24 {strides = array<i32>} : memref<256x128xf32, #tpu.memory_space<vmem>>, vector<256x128xf32>,
    return
  }
  func.func @transform_0(%arg0: i32) -> (i32, i32) {
    %c0_i32 = arith.constant 0 : i32
    %c0_i32_0 = arith.constant 0 : i32
    return %arg0, %c0_i32 : i32, i32
  }
  func.func @transform_1(%arg0: i32) -> (i32, i32) {
    %c0_i32 = arith.constant 0 : i32
    %c0_i32_0 = arith.constant 0 : i32
    %c0_i32_1 = arith.constant 0 : i32
    return %c0_i32, %c0_i32_0 : i32, i32
  }
  func.func @transform_2(%arg0: i32) -> (i32, i32) {
    %c0_i32 = arith.constant 0 : i32
    %c0_i32_0 = arith.constant 0 : i32
    return %arg0, %c0_i32 : i32, i32
  }
}

</mosaic_0001>

<bundles_post_ra>
// kernel: tpu_custom_call.1
= control target key start
LH: loop header
LB: loop body
LE: loop exit
PB: predicated region body
PF: predicated region fallthrough
CT: control target
= control target key end

     0   :  { %7 = vsyncpa [#allocation3], 0  ;;  %s1740_s0 = inlined_call_operand.vmem [shape: f32[512,32], index: 0, kind: input, shape index: {}]   ;;  %s1741_s1 = inlined_call_operand.vmem [shape: f32[88,128], index: 1, kind: input, shape index: {}]   ;;  %s1742_s2 = inlined_call_operand.hbm [shape: f32[512,128], index: 2, kind: output, shape index: {}]  }
   0x1   :  { %9 = vsyncpa [#allocation3 + $0x1], 0  ;;  %s1320_s9 = smov 0   ;;  %s1322_s10 = smov 0  }
   0x2   :  { %s1324_s11 = smov 0   ;;  %s1326_s12 = smov 0  }
   0x3 LB: > { %s1341_s13 = sadd.s32 4294967295, %s1300_s12   ;;  %s1105_s14 = sadd.s32 4294967294, %s1300_s12   ;;  %s1300_s12 = sphi %s1326_s12, %s1748_s12   ;;  %s1296_s11 = sphi %s1324_s11, %s1747_s11   ;;  %s1292_s10 = sphi %s1322_s10, %s1746_s10   ;;  %s1288_s9 = sphi %s1320_s9, %s1745_s9  }
   0x4   : > { %s1345_s15 = sadd.s32 1, %s1300_s12   ;;  %s69_s16 = sadd.s32 1, %s1296_s11 }
   0x5   : > { %s66_s17 = ssub.s32 %s1300_s12, %s1345_s15  ;;  %p79_p0 = scmp.ne.s32.totalorder %s1296_s11, %s1292_s10 }
   0x6   : > { %p67_p1 = scmp.eq.s32.totalorder %s66_s17, 0  ;;  %p80_p2 = scmp.eq.s32.totalorder %s1341_s13, 1 }
   0x7   : > { %p85_p3 = scmp.ne.s32.totalorder %s1292_s10, %s1288_s9  ;;  %p86_p4 = scmp.eq.s32.totalorder %s1105_s14, 1 }
   0x8   : > { %s1356_s18 = scalar_select %p67_p1, %s1296_s11, %s69_s16  }
   0x9   : > { %p1358_p5 = por %p80_p2, %p79_p0  ;;  %p1362_p6 = por %p86_p4, %p85_p3 }
   0xa   : > { %p1108_p7 = scmp.ge.s32.totalorder %s1300_s12, 1  ;;  %p116_p8 = scmp.lt.s32.totalorder %s1300_s12, 3 }
   0xc   : > { %p117_p9 = pnand %p1108_p7, %p116_p8 }
   0xd   : > { %s1110_s25 = sshll.u32 (!%p117_p9), %s1341_s13, 5  ;;  %s135_s29 = sand.u32 (!%p117_p9), 1, %s1292_s10  }
   0xe   : > { %120 = sbr.rel (%p117_p9) target bundleno = 706 (0x2c2), region = 28  ;;  %p139_p10 = scmp.lt.s32.totalorder (!%p117_p9), %s1110_s25, 63 }
   0xf   : > { %s1181_s4 = sshll.u32 (!%p117_p9), %s1341_s13, 8  ;;  %s1028_s16 = scalar_lea.sflag (!%p117_p9), [#allocation3], %s135_s29 }
  0x10   : > { %s1039_s7 = scalar_lea.hbm (!%p117_p9), %s1742_s2, %s1181_s4  ;;  %s1258_s23 = scalar_lea.hbm (!%p117_p9), %s1742_s2, 512 }
  0x11   : > { %s1042_s14 = sshll.u32 (!%p117_p9), %s1039_s7, 4  ;;  %s1043_s14 = int_to_ptr.hbm [resolvable:$true] %s1042_s14 }
  0x12   : > { %s1252_s17 = sshra.s32 (!%p117_p9), %s1043_s14, 4  ;;  %s1253_s17 = int_to_ptr.hbm [resolvable:$true] %s1252_s17 }
  0x13   : > { %v180_v0 = vld [vmem:[%s1741_s1 + $0x18] sm:$0xff]  ;;  %v179_v1 = vld [vmem:[%s1741_s1 + $0x10] sm:$0xff]  ;;  %v178_v2 = vld [vmem:[%s1741_s1 + $0x8] sm:$0xff]  ;;  %s1750_s25 = smov (!%p139_p10, %s1110_s25), 63  ;;  %vm189_vm0 = vcmask 261120   ;;  %vm706_vm1 = vcmask 130048   ;;  %p1259_p0 = scmp.lt.s32.totalorder %s1253_s17, %s1742_s2 }
  0x14   : > { %298 = vmatpush.msra.mxu0 %v180_v0  ;;  %1182 = vmatpush.msra.mxu2 %v180_v0  ;;  %v177_v3 = vld [vmem:[%s1741_s1] sm:$0xff]  ;;  %s1111_s30 = sshll.u32 %s1750_s25, 3  ;;  %v184_v29 = vld [vmem:[%s1741_s1 + $0x38] sm:$0xff]  ;;  %v183_v32 = vld [vmem:[%s1741_s1 + $0x30] sm:$0xff]  ;;  %s1254_s21 = scalar_lea.hbm %s1253_s17, 256 }
  0x15   : > { %s1384_s5 = scalar_lea.vmem %s1740_s0, %s1111_s30  ;;  %v185_v28 = vld [vmem:[%s1741_s1 + $0x40] sm:$0xff]  ;;  %v182_v33 = vld [vmem:[%s1741_s1 + $0x28] sm:$0xff]  ;;  %s1109_s30 = sshll.u32 %s135_s29, 8 }
  0x16   : > { %299 = vmatpush.msra.mxu0 %v179_v1  ;;  %1183 = vmatpush.msra.mxu2 %v179_v1  ;;  %v145_v4 = vld [vmem:[%s1384_s5] sm:$0xff]  ;;  %v146_v6 = vld [vmem:[%s1384_s5 + $0x8] sm:$0xff]  ;;  %v147_v8 = vld [vmem:[%s1384_s5 + $0x10] sm:$0xff]  ;;  %s1667_s3 = scalar_lea.vmem [#allocation2], %s1109_s30  ;;  %p1255_p11 = scmp.ne.s32.totalorder %s1253_s17, %s1254_s21 }
  0x17   : > { %v161_v5 = vld [vmem:[%s1384_s5 + $0x80] sm:$0xff]  ;;  %v162_v7 = vld [vmem:[%s1384_s5 + $0x88] sm:$0xff]  ;;  %v163_v9 = vld [vmem:[%s1384_s5 + $0x90] sm:$0xff]  ;;  %540 = vmatpush.msra.mxu1 %v185_v28  ;;  %1186 = vmatpush.msra.mxu3 %v185_v28  ;;  %s1040_s8 = sshll.u32 %s1667_s3, 4  ;;  %p1260_p1 = scmp.lt.s32.totalorder %s1258_s23, %s1254_s21  ;;  %s1041_s8 = int_to_ptr.vmem [resolvable:$true] %s1040_s8 }
  0x18   : > { %300 = vmatpush.msra.mxu0 %v178_v2  ;;  %1184 = vmatpush.msra.mxu2 %v178_v2  ;;  %v148_v10 = vld [vmem:[%s1384_s5 + $0x18] sm:$0xff]  ;;  %v149_v12 = vld [vmem:[%s1384_s5 + $0x20] sm:$0xff]  ;;  %v150_v14 = vld [vmem:[%s1384_s5 + $0x28] sm:$0xff]  ;;  %p1256_p12 = pnand %p1255_p11, %p1358_p5 }
  0x19   : > { %v164_v11 = vld [vmem:[%s1384_s5 + $0x98] sm:$0xff]  ;;  %v165_v13 = vld [vmem:[%s1384_s5 + $0xa0] sm:$0xff]  ;;  %v166_v15 = vld [vmem:[%s1384_s5 + $0xa8] sm:$0xff]  ;;  %541 = vmatpush.msra.mxu1 %v184_v29  ;;  %1187 = vmatpush.msra.mxu3 %v184_v29  ;;  %p1261_p2 = por %p1260_p1, %p1259_p0 }
  0x1a   : > { %301 = vmatpush.msra.mxu0 %v177_v3  ;;  %1185 = vmatpush.msra.mxu2 %v177_v3  ;;  %v151_v16 = vld [vmem:[%s1384_s5 + $0x30] sm:$0xff]  ;;  %v152_v18 = vld [vmem:[%s1384_s5 + $0x38] sm:$0xff]  ;;  %v153_v20 = vld [vmem:[%s1384_s5 + $0x40] sm:$0xff]  ;;  %p1257_p13 = pneg %p1256_p12 }
  0x1b   : > { %1112 = vmatmul.msk.f32.vlgmr.msra.gmra.mxu0 %vm189_vm0, %v145_v4  ;;  %1128 = vmatmul.msk.f32.vlgmr.msra.gmra.mxu2 %vm189_vm0, %v161_v5  ;;  %v167_v17 = vld [vmem:[%s1384_s5 + $0xb0] sm:$0xff]  ;;  %v168_v19 = vld [vmem:[%s1384_s5 + $0xb8] sm:$0xff]  ;;  %v169_v21 = vld [vmem:[%s1384_s5 + $0xc0] sm:$0xff] }
  0x1c   : > { %v154_v22 = vld [vmem:[%s1384_s5 + $0x48] sm:$0xff]  ;;  %v155_v24 = vld [vmem:[%s1384_s5 + $0x50] sm:$0xff]  ;;  %v156_v26 = vld [vmem:[%s1384_s5 + $0x58] sm:$0xff]  ;;  %542 = vmatpush.msra.mxu1 %v183_v32  ;;  %1188 = vmatpush.msra.mxu3 %v183_v32  ;;  %p1262_p3 = pnand %p1261_p2, %p1257_p13 }
  0x1d   : > { %v170_v23 = vld [vmem:[%s1384_s5 + $0xc8] sm:$0xff]  ;;  %v171_v25 = vld [vmem:[%s1384_s5 + $0xd0] sm:$0xff]  ;;  %v172_v27 = vld [vmem:[%s1384_s5 + $0xd8] sm:$0xff] }
  0x1e   : > { %v157_v30 = vld [vmem:[%s1384_s5 + $0x60] sm:$0xff]  ;;  %543 = vmatpush.msra.mxu1 %v182_v33  ;;  %1189 = vmatpush.msra.mxu3 %v182_v33  ;;  %v158_v34 = vld [vmem:[%s1384_s5 + $0x68] sm:$0xff]  ;;  %v159_v36 = vld [vmem:[%s1384_s5 + $0x70] sm:$0xff] }
  0x1f   : > { %v173_v31 = vld [vmem:[%s1384_s5 + $0xe0] sm:$0xff]  ;;  %v174_v35 = vld [vmem:[%s1384_s5 + $0xe8] sm:$0xff]  ;;  %v175_v37 = vld [vmem:[%s1384_s5 + $0xf0] sm:$0xff] }
  0x20   : > { %v160_v38 = vld [vmem:[%s1384_s5 + $0x78] sm:$0xff]  ;;  %v1463_v39 = vld [vmem:[%s1741_s1 + $0x20] ss:$0 sm:$0xff] }
  0x21   : > { %v176_v48 = vld [vmem:[%s1384_s5 + $0xf8] sm:$0xff] }
  0x23   : > { %1113 = vmatmul.msk.f32.gmra.mxu0 %vm189_vm0, %v146_v6  ;;  %1129 = vmatmul.msk.f32.gmra.mxu2 %vm189_vm0, %v162_v7 }
  0x2b   : > { %1114 = vmatmul.msk.f32.gmra.mxu0 %vm189_vm0, %v147_v8  ;;  %1130 = vmatmul.msk.f32.gmra.mxu2 %vm189_vm0, %v163_v9 }
  0x33   : > { %1115 = vmatmul.msk.f32.gmra.mxu0 %vm189_vm0, %v148_v10  ;;  %1131 = vmatmul.msk.f32.gmra.mxu2 %vm189_vm0, %v164_v11 }
  0x3b   : > { %1116 = vmatmul.msk.f32.gmra.mxu0 %vm189_vm0, %v149_v12  ;;  %1132 = vmatmul.msk.f32.gmra.mxu2 %vm189_vm0, %v165_v13 }
  0x43   : > { %1117 = vmatmul.msk.f32.gmra.mxu0 %vm189_vm0, %v150_v14  ;;  %1133 = vmatmul.msk.f32.gmra.mxu2 %vm189_vm0, %v166_v15 }
  0x4b   : > { %1118 = vmatmul.msk.f32.gmra.mxu0 %vm189_vm0, %v151_v16  ;;  %1134 = vmatmul.msk.f32.gmra.mxu2 %vm189_vm0, %v167_v17 }
  0x53   : > { %1119 = vmatmul.msk.f32.gmra.mxu0 %vm189_vm0, %v152_v18  ;;  %1135 = vmatmul.msk.f32.gmra.mxu2 %vm189_vm0, %v168_v19 }
  0x5b   : > { %1120 = vmatmul.msk.f32.gmra.mxu0 %vm189_vm0, %v153_v20  ;;  %1136 = vmatmul.msk.f32.gmra.mxu2 %vm189_vm0, %v169_v21 }
  0x63   : > { %1121 = vmatmul.msk.f32.gmra.mxu0 %vm189_vm0, %v154_v22  ;;  %1137 = vmatmul.msk.f32.gmra.mxu2 %vm189_vm0, %v170_v23 }
  0x6b   : > { %1122 = vmatmul.msk.f32.gmra.mxu0 %vm189_vm0, %v155_v24  ;;  %1138 = vmatmul.msk.f32.gmra.mxu2 %vm189_vm0, %v171_v25 }
  0x73   : > { %1123 = vmatmul.msk.f32.gmra.mxu0 %vm189_vm0, %v156_v26  ;;  %1139 = vmatmul.msk.f32.gmra.mxu2 %vm189_vm0, %v172_v27 }
  0x7b   : > { %1124 = vmatmul.msk.f32.gmra.mxu0 %vm189_vm0, %v157_v30  ;;  %1140 = vmatmul.msk.f32.gmra.mxu2 %vm189_vm0, %v173_v31 }
  0x83   : > { %1125 = vmatmul.msk.f32.gmra.mxu0 %vm189_vm0, %v158_v34  ;;  %1141 = vmatmul.msk.f32.gmra.mxu2 %vm189_vm0, %v174_v35 }
  0x8b   : > { %1126 = vmatmul.msk.f32.gmra.mxu0 %vm189_vm0, %v159_v36  ;;  %1142 = vmatmul.msk.f32.gmra.mxu2 %vm189_vm0, %v175_v37 }
  0x93   : > { %1127 = vmatmul.msk.f32.gmra.mxu0 %vm189_vm0, %v160_v38  ;;  %1143 = vmatmul.msk.f32.gmra.mxu2 %vm189_vm0, %v176_v48 }
  0x98   : > { %v303_v40 = vpop.f32.mrf.mxu0 }
  0x99   : > { %v304_v41 = vadd.f32 %v1463_v39, %v303_v40 }
  0x9b   : > { %v399_v42 = vmax.f32 %v304_v41, 0.0 }
  0x9d   : > { %1144 = vmatmul.msk.f32.vlgmr.msra.gmra.mxu1 %vm189_vm0, %v399_v42 }
  0x9e   : > { %v351_v43 = vpop.f32.mrf.mxu2 }
  0x9f   : > { %v352_v44 = vadd.f32 %v1463_v39, %v351_v43 }
  0xa0   : > { %v306_v45 = vpop.f32.mrf.mxu0 }
  0xa1   : > { %v415_v46 = vmax.f32 %v352_v44, 0.0  ;;  %v307_v47 = vadd.f32 %v1463_v39, %v306_v45 }
  0xa3   : > { %v400_v49 = vmax.f32 %v307_v47, 0.0  ;;  %1160 = vmatmul.msk.f32.vlgmr.msra.gmra.mxu3 %vm189_vm0, %v415_v46 }
  0xa5   : > { %1145 = vmatmul.msk.f32.gmra.mxu1 %vm189_vm0, %v400_v49 }
  0xa6   : > { %v354_v50 = vpop.f32.mrf.mxu2 }
  0xa7   : > { %v355_v51 = vadd.f32 %v1463_v39, %v354_v50 }
  0xa8   : > { %v309_v52 = vpop.f32.mrf.mxu0 }
  0xa9   : > { %v310_v53 = vadd.f32 %v1463_v39, %v309_v52  ;;  %v416_v54 = vmax.f32 %v355_v51, 0.0 }
  0xab   : > { %v401_v55 = vmax.f32 %v310_v53, 0.0  ;;  %1161 = vmatmul.msk.f32.gmra.mxu3 %vm189_vm0, %v416_v54 }
  0xad   : > { %1146 = vmatmul.msk.f32.gmra.mxu1 %vm189_vm0, %v401_v55 }
  0xae   : > { %v357_v56 = vpop.f32.mrf.mxu2 }
  0xaf   : > { %v358_v57 = vadd.f32 %v1463_v39, %v357_v56 }
  0xb0   : > { %v312_v58 = vpop.f32.mrf.mxu0 }
  0xb1   : > { %v313_v59 = vadd.f32 %v1463_v39, %v312_v58  ;;  %v417_v60 = vmax.f32 %v358_v57, 0.0 }
  0xb3   : > { %v402_v61 = vmax.f32 %v313_v59, 0.0  ;;  %1162 = vmatmul.msk.f32.gmra.mxu3 %vm189_vm0, %v417_v60 }
  0xb5   : > { %1147 = vmatmul.msk.f32.gmra.mxu1 %vm189_vm0, %v402_v61 }
  0xb6   : > { %v360_v62 = vpop.f32.mrf.mxu2 }
  0xb7   : > { %v361_v63 = vadd.f32 %v1463_v39, %v360_v62 }
  0xb8   : > { %v315_v0 = vpop.f32.mrf.mxu0 }
  0xb9   : > { %v316_v1 = vadd.f32 %v1463_v39, %v315_v0  ;;  %v418_v2 = vmax.f32 %v361_v63, 0.0 }
  0xbb   : > { %v403_v3 = vmax.f32 %v316_v1, 0.0  ;;  %1163 = vmatmul.msk.f32.gmra.mxu3 %vm189_vm0, %v418_v2 }
  0xbd   : > { %1148 = vmatmul.msk.f32.gmra.mxu1 %vm189_vm0, %v403_v3 }
  0xbe   : > { %v363_v4 = vpop.f32.mrf.mxu2 }
  0xbf   : > { %v364_v5 = vadd.f32 %v1463_v39, %v363_v4 }
  0xc0   : > { %v318_v6 = vpop.f32.mrf.mxu0 }
  0xc1   : > { %v319_v7 = vadd.f32 %v1463_v39, %v318_v6  ;;  %v419_v8 = vmax.f32 %v364_v5, 0.0 }
  0xc3   : > { %v404_v9 = vmax.f32 %v319_v7, 0.0  ;;  %1164 = vmatmul.msk.f32.gmra.mxu3 %vm189_vm0, %v419_v8  ;;  %v1532_v7 = vld [vmem:[%s1741_s1 + $0x48] ss:$0 sm:$0xff] }
  0xc5   : > { %1149 = vmatmul.msk.f32.gmra.mxu1 %vm189_vm0, %v404_v9 }
  0xc6   : > { %v366_v10 = vpop.f32.mrf.mxu2 }
  0xc7   : > { %v367_v11 = vadd.f32 %v1463_v39, %v366_v10  ;;  %v1538_v10 = vld [vmem:[%s1741_s1 + $0x50] ss:$0 sm:$0xff] }
  0xc8   : > { %v321_v12 = vpop.f32.mrf.mxu0 }
  0xc9   : > { %v322_v13 = vadd.f32 %v1463_v39, %v321_v12  ;;  %v420_v14 = vmax.f32 %v367_v11, 0.0 }
  0xcb   : > { %v405_v15 = vmax.f32 %v322_v13, 0.0  ;;  %1165 = vmatmul.msk.f32.gmra.mxu3 %vm189_vm0, %v420_v14 }
  0xcd   : > { %1150 = vmatmul.msk.f32.gmra.mxu1 %vm189_vm0, %v405_v15 }
  0xce   : > { %v369_v16 = vpop.f32.mrf.mxu2 }
  0xcf   : > { %v370_v17 = vadd.f32 %v1463_v39, %v369_v16 }
  0xd0   : > { %v324_v18 = vpop.f32.mrf.mxu0 }
  0xd1   : > { %v325_v19 = vadd.f32 %v1463_v39, %v324_v18  ;;  %v421_v20 = vmax.f32 %v370_v17, 0.0 }
  0xd3   : > { %v406_v21 = vmax.f32 %v325_v19, 0.0  ;;  %1166 = vmatmul.msk.f32.gmra.mxu3 %vm189_vm0, %v421_v20 }
  0xd5   : > { %1151 = vmatmul.msk.f32.gmra.mxu1 %vm189_vm0, %v406_v21 }
  0xd6   : > { %v372_v22 = vpop.f32.mrf.mxu2 }
  0xd7   : > { %v373_v23 = vadd.f32 %v1463_v39, %v372_v22 }
  0xd8   : > { %v327_v24 = vpop.f32.mrf.mxu0 }
  0xd9   : > { %v328_v25 = vadd.f32 %v1463_v39, %v327_v24  ;;  %v422_v26 = vmax.f32 %v373_v23, 0.0 }
  0xdb   : > { %v407_v27 = vmax.f32 %v328_v25, 0.0  ;;  %1167 = vmatmul.msk.f32.gmra.mxu3 %vm189_vm0, %v422_v26 }
  0xdd   : > { %1152 = vmatmul.msk.f32.gmra.mxu1 %vm189_vm0, %v407_v27 }
  0xde   : > { %v375_v28 = vpop.f32.mrf.mxu2 }
  0xdf   : > { %v376_v29 = vadd.f32 %v1463_v39, %v375_v28 }
  0xe0   : > { %v330_v30 = vpop.f32.mrf.mxu0 }
  0xe1   : > { %v331_v31 = vadd.f32 %v1463_v39, %v330_v30  ;;  %v423_v32 = vmax.f32 %v376_v29, 0.0 }
  0xe3   : > { %v408_v33 = vmax.f32 %v331_v31, 0.0  ;;  %1168 = vmatmul.msk.f32.gmra.mxu3 %vm189_vm0, %v423_v32 }
  0xe5   : > { %1153 = vmatmul.msk.f32.gmra.mxu1 %vm189_vm0, %v408_v33 }
  0xe6   : > { %v378_v34 = vpop.f32.mrf.mxu2 }
  0xe7   : > { %v379_v35 = vadd.f32 %v1463_v39, %v378_v34 }
  0xe8   : > { %v333_v36 = vpop.f32.mrf.mxu0 }
  0xe9   : > { %v334_v37 = vadd.f32 %v1463_v39, %v333_v36  ;;  %v424_v38 = vmax.f32 %v379_v35, 0.0 }
  0xeb   : > { %v409_v40 = vmax.f32 %v334_v37, 0.0  ;;  %1169 = vmatmul.msk.f32.gmra.mxu3 %vm189_vm0, %v424_v38 }
  0xed   : > { %1154 = vmatmul.msk.f32.gmra.mxu1 %vm189_vm0, %v409_v40 }
  0xee   : > { %v381_v41 = vpop.f32.mrf.mxu2 }
  0xef   : > { %v382_v42 = vadd.f32 %v1463_v39, %v381_v41 }
  0xf0   : > { %v336_v43 = vpop.f32.mrf.mxu0 }
  0xf1   : > { %v337_v44 = vadd.f32 %v1463_v39, %v336_v43  ;;  %v425_v45 = vmax.f32 %v382_v42, 0.0 }
  0xf3   : > { %v410_v46 = vmax.f32 %v337_v44, 0.0  ;;  %1170 = vmatmul.msk.f32.gmra.mxu3 %vm189_vm0, %v425_v45 }
  0xf5   : > { %1155 = vmatmul.msk.f32.gmra.mxu1 %vm189_vm0, %v410_v46 }
  0xf6   : > { %v384_v47 = vpop.f32.mrf.mxu2 }
  0xf7   : > { %v385_v48 = vadd.f32 %v1463_v39, %v384_v47 }
  0xf8   : > { %v339_v49 = vpop.f32.mrf.mxu0 }
  0xf9   : > { %v340_v50 = vadd.f32 %v1463_v39, %v339_v49  ;;  %v426_v51 = vmax.f32 %v385_v48, 0.0 }
  0xfb   : > { %v411_v52 = vmax.f32 %v340_v50, 0.0  ;;  %1171 = vmatmul.msk.f32.gmra.mxu3 %vm189_vm0, %v426_v51 }
  0xfd   : > { %1156 = vmatmul.msk.f32.gmra.mxu1 %vm189_vm0, %v411_v52 }
  0xfe   : > { %v387_v53 = vpop.f32.mrf.mxu2 }
  0xff   : > { %v388_v54 = vadd.f32 %v1463_v39, %v387_v53 }
 0x100   : > { %v342_v55 = vpop.f32.mrf.mxu0 }
 0x101   : > { %v343_v56 = vadd.f32 %v1463_v39, %v342_v55  ;;  %v427_v57 = vmax.f32 %v388_v54, 0.0 }
 0x103   : > { %v412_v58 = vmax.f32 %v343_v56, 0.0  ;;  %1172 = vmatmul.msk.f32.gmra.mxu3 %vm189_vm0, %v427_v57 }
 0x105   : > { %1157 = vmatmul.msk.f32.gmra.mxu1 %vm189_vm0, %v412_v58 }
 0x106   : > { %v390_v59 = vpop.f32.mrf.mxu2 }
 0x107   : > { %v391_v60 = vadd.f32 %v1463_v39, %v390_v59 }
 0x108   : > { %v345_v61 = vpop.f32.mrf.mxu0 }
 0x109   : > { %v346_v62 = vadd.f32 %v1463_v39, %v345_v61  ;;  %v428_v63 = vmax.f32 %v391_v60, 0.0 }
 0x10b   : > { %v413_v0 = vmax.f32 %v346_v62, 0.0  ;;  %1173 = vmatmul.msk.f32.gmra.mxu3 %vm189_vm0, %v428_v63 }
 0x10d   : > { %1158 = vmatmul.msk.f32.gmra.mxu1 %vm189_vm0, %v413_v0 }
 0x10e   : > { %v393_v1 = vpop.f32.mrf.mxu2 }
 0x10f   : > { %v394_v2 = vadd.f32 %v1463_v39, %v393_v1 }
 0x110   : > { %v348_v3 = vpop.f32.mrf.mxu0 }
 0x111   : > { %v349_v4 = vadd.f32 %v1463_v39, %v348_v3  ;;  %v429_v5 = vmax.f32 %v394_v2, 0.0 }
 0x113   : > { %v414_v6 = vmax.f32 %v349_v4, 0.0  ;;  %1174 = vmatmul.msk.f32.gmra.mxu3 %vm189_vm0, %v429_v5 }
 0x115   : > { %1159 = vmatmul.msk.f32.gmra.mxu1 %vm189_vm0, %v414_v6 }
 0x116   : > { %v396_v17 = vpop.f32.mrf.mxu2 }
 0x117   : > { %v397_v19 = vadd.f32 %v1463_v39, %v396_v17 }
 0x119   : > { %v430_v22 = vmax.f32 %v397_v19, 0.0 }
 0x11a   : > { %v545_v8 = vpop.f32.mrf.mxu1 }
 0x11b   : > { %v546_v9 = vadd.f32 %v1532_v7, %v545_v8  ;;  %1175 = vmatmul.msk.f32.gmra.mxu3 %vm189_vm0, %v430_v22 }
 0x11d   : > { %v641_v11 = vmax.f32 %v546_v9, 0.0 }
 0x11f   : > { %v674_v12 = vmul.f32 %v1538_v10, %v641_v11 }
 0x121   : > { %v707_v13 = vsel %vm706_vm1, %v674_v12, 0.0 }
 0x122   : > { %v548_v14 = vpop.f32.mrf.mxu1  ;;  %708 = vadd.xlane.f32.xlu0 %v707_v13 }
 0x123   : > { %v549_v15 = vadd.f32 %v1532_v7, %v548_v14 }
 0x125   : > { %v642_v16 = vmax.f32 %v549_v15, 0.0 }
 0x126   : > { %v593_v18 = vpop.f32.mrf.mxu3 }
 0x127   : > { %v594_v20 = vadd.f32 %v1532_v7, %v593_v18  ;;  %v675_v21 = vmul.f32 %v1538_v10, %v642_v16 }
 0x129   : > { %v657_v23 = vmax.f32 %v594_v20, 0.0  ;;  %v710_v24 = vsel %vm706_vm1, %v675_v21, 0.0 }
 0x12a   : > { %v551_v25 = vpop.f32.mrf.mxu1  ;;  %711 = vadd.xlane.f32.xlu0 %v710_v24 }
 0x12b   : > { %v552_v26 = vadd.f32 %v1532_v7, %v551_v25  ;;  %v690_v27 = vmul.f32 %v1538_v10, %v657_v23 }
 0x12d   : > { %v643_v28 = vmax.f32 %v552_v26, 0.0  ;;  %v755_v29 = vsel %vm706_vm1, %v690_v27, 0.0 }
 0x12e   : > { %756 = vadd.xlane.f32.xlu1 %v755_v29  ;;  %v596_v39 = vpop.f32.mrf.mxu3 }
 0x12f   : > { %v597_v30 = vadd.f32 %v1532_v7, %v596_v39  ;;  %v676_v32 = vmul.f32 %v1538_v10, %v643_v28 }
 0x131   : > { %v658_v31 = vmax.f32 %v597_v30, 0.0  ;;  %v713_v37 = vsel %vm706_vm1, %v676_v32, 0.0 }
 0x132   : > { %v554_v33 = vpop.f32.mrf.mxu1 }
 0x133   : > { %v555_v34 = vadd.f32 %v1532_v7, %v554_v33  ;;  %v691_v35 = vmul.f32 %v1538_v10, %v658_v31 }
 0x135   : > { %v644_v36 = vmax.f32 %v555_v34, 0.0  ;;  %v758_v38 = vsel %vm706_vm1, %v691_v35, 0.0 }
 0x136   : > { %714 = vadd.xlane.f32.xlu1 %v713_v37  ;;  %v599_v40 = vpop.f32.mrf.mxu3  ;;  %759 = vadd.xlane.f32.xlu2 %v758_v38 }
 0x137   : > { %v600_v41 = vadd.f32 %v1532_v7, %v599_v40  ;;  %v677_v43 = vmul.f32 %v1538_v10, %v644_v36 }
 0x139   : > { %v659_v42 = vmax.f32 %v600_v41, 0.0  ;;  %v716_v48 = vsel %vm706_vm1, %v677_v43, 0.0 }
 0x13a   : > { %v557_v44 = vpop.f32.mrf.mxu1 }
 0x13b   : > { %v558_v45 = vadd.f32 %v1532_v7, %v557_v44  ;;  %v692_v46 = vmul.f32 %v1538_v10, %v659_v42 }
 0x13d   : > { %v645_v47 = vmax.f32 %v558_v45, 0.0  ;;  %v761_v49 = vsel %vm706_vm1, %v692_v46, 0.0 }
 0x13e   : > { %717 = vadd.xlane.f32.xlu1 %v716_v48  ;;  %v602_v50 = vpop.f32.mrf.mxu3  ;;  %762 = vadd.xlane.f32.xlu0 %v761_v49 }
 0x13f   : > { %v603_v51 = vadd.f32 %v1532_v7, %v602_v50  ;;  %v678_v52 = vmul.f32 %v1538_v10, %v645_v47 }
 0x141   : > { %v660_v53 = vmax.f32 %v603_v51, 0.0  ;;  %v719_v54 = vsel %vm706_vm1, %v678_v52, 0.0 }
 0x142   : > { %v560_v55 = vpop.f32.mrf.mxu1  ;;  %720 = vadd.xlane.f32.xlu2 %v719_v54 }
 0x143   : > { %v561_v56 = vadd.f32 %v1532_v7, %v560_v55  ;;  %v693_v57 = vmul.f32 %v1538_v10, %v660_v53 }
 0x145   : > { %v646_v58 = vmax.f32 %v561_v56, 0.0  ;;  %v764_v59 = vsel %vm706_vm1, %v693_v57, 0.0 }
 0x146   : > { %v605_v60 = vpop.f32.mrf.mxu3  ;;  %765 = vadd.xlane.f32.xlu1 %v764_v59 }
 0x147   : > { %v606_v61 = vadd.f32 %v1532_v7, %v605_v60  ;;  %v679_v62 = vmul.f32 %v1538_v10, %v646_v58 }
 0x149   : > { %v661_v63 = vmax.f32 %v606_v61, 0.0  ;;  %v722_v0 = vsel %vm706_vm1, %v679_v62, 0.0 }
 0x14a   : > { %v563_v1 = vpop.f32.mrf.mxu1  ;;  %723 = vadd.xlane.f32.xlu2 %v722_v0 }
 0x14b   : > { %v564_v2 = vadd.f32 %v1532_v7, %v563_v1  ;;  %v694_v3 = vmul.f32 %v1538_v10, %v661_v63 }
 0x14d   : > { %v647_v4 = vmax.f32 %v564_v2, 0.0  ;;  %v767_v8 = vsel %vm706_vm1, %v694_v3, 0.0 }
 0x14e   : > { %v608_v5 = vpop.f32.mrf.mxu3 }
 0x14f   : > { %v609_v6 = vadd.f32 %v1532_v7, %v608_v5  ;;  %v680_v9 = vmul.f32 %v1538_v10, %v647_v4 }
 0x151   : > { %v662_v11 = vmax.f32 %v609_v6, 0.0  ;;  %v725_v12 = vsel %vm706_vm1, %v680_v9, 0.0 }
 0x152   : > { %v566_v13 = vpop.f32.mrf.mxu1  ;;  %768 = vadd.xlane.f32.xlu2 %v767_v8  ;;  %726 = vadd.xlane.f32.xlu0 %v725_v12 }
 0x153   : > { %v567_v14 = vadd.f32 %v1532_v7, %v566_v13  ;;  %v695_v15 = vmul.f32 %v1538_v10, %v662_v11 }
 0x155   : > { %v648_v16 = vmax.f32 %v567_v14, 0.0  ;;  %v770_v20 = vsel %vm706_vm1, %v695_v15, 0.0 }
 0x156   : > { %v611_v17 = vpop.f32.mrf.mxu3 }
 0x157   : > { %v612_v18 = vadd.f32 %v1532_v7, %v611_v17  ;;  %v681_v19 = vmul.f32 %v1538_v10, %v648_v16 }
 0x159   : > { %v663_v21 = vmax.f32 %v612_v18, 0.0  ;;  %v728_v22 = vsel %vm706_vm1, %v681_v19, 0.0 }
 0x15a   : > { %v569_v23 = vpop.f32.mrf.mxu1  ;;  %729 = vadd.xlane.f32.xlu1 %v728_v22  ;;  %771 = vadd.xlane.f32.xlu0 %v770_v20 }
 0x15b   : > { %v570_v24 = vadd.f32 %v1532_v7, %v569_v23  ;;  %v696_v25 = vmul.f32 %v1538_v10, %v663_v21 }
 0x15d   : > { %v649_v26 = vmax.f32 %v570_v24, 0.0  ;;  %v773_v39 = vsel %vm706_vm1, %v696_v25, 0.0  ;;  %v1302_v24 = vmov 16  }
 0x15e   : > { %v614_v27 = vpop.f32.mrf.mxu3  ;;  %1234 = vset.pattern.permute.xlu1 %v1302_v24  ;;  %1232 = vset.pattern.permute.xlu2 %v1302_v24 }
 0x15f   : > { %v615_v28 = vadd.f32 %v1532_v7, %v614_v27  ;;  %v682_v29 = vmul.f32 %v1538_v10, %v649_v26  ;;  %1233 = vset.pattern.permute.xlu0 %v1302_v24 }
 0x161   : > { %v664_v30 = vmax.f32 %v615_v28, 0.0  ;;  %v731_v31 = vsel %vm706_vm1, %v682_v29, 0.0 }
 0x162   : > { %v572_v32 = vpop.f32.mrf.mxu1  ;;  %732 = vadd.xlane.f32.xlu2 %v731_v31  ;;  %774 = vadd.xlane.f32.xlu1 %v773_v39 }
 0x163   : > { %v573_v33 = vadd.f32 %v1532_v7, %v572_v32  ;;  %v697_v34 = vmul.f32 %v1538_v10, %v664_v30 }
 0x165   : > { %v650_v35 = vmax.f32 %v573_v33, 0.0  ;;  %v776_v38 = vsel %vm706_vm1, %v697_v34, 0.0 }
 0x166   : > { %v617_v36 = vpop.f32.mrf.mxu3 }
 0x167   : > { %v618_v37 = vadd.f32 %v1532_v7, %v617_v36  ;;  %v683_v40 = vmul.f32 %v1538_v10, %v650_v35 }
 0x169   : > { %v665_v41 = vmax.f32 %v618_v37, 0.0  ;;  %v734_v42 = vsel %vm706_vm1, %v683_v40, 0.0 }
 0x16a   : > { %v575_v43 = vpop.f32.mrf.mxu1  ;;  %777 = vadd.xlane.f32.xlu2 %v776_v38  ;;  %735 = vadd.xlane.f32.xlu0 %v734_v42 }
 0x16b   : > { %v576_v44 = vadd.f32 %v1532_v7, %v575_v43  ;;  %v698_v45 = vmul.f32 %v1538_v10, %v665_v41 }
 0x16d   : > { %v651_v46 = vmax.f32 %v576_v44, 0.0  ;;  %v779_v50 = vsel %vm706_vm1, %v698_v45, 0.0 }
 0x16e   : > { %v620_v47 = vpop.f32.mrf.mxu3 }
 0x16f   : > { %v621_v48 = vadd.f32 %v1532_v7, %v620_v47  ;;  %v684_v49 = vmul.f32 %v1538_v10, %v651_v46 }
 0x171   : > { %v666_v51 = vmax.f32 %v621_v48, 0.0  ;;  %v737_v52 = vsel %vm706_vm1, %v684_v49, 0.0 }
 0x172   : > { %v578_v53 = vpop.f32.mrf.mxu1  ;;  %738 = vadd.xlane.f32.xlu1 %v737_v52  ;;  %780 = vadd.xlane.f32.xlu0 %v779_v50 }
 0x173   : > { %v579_v54 = vadd.f32 %v1532_v7, %v578_v53  ;;  %v699_v55 = vmul.f32 %v1538_v10, %v666_v51 }
 0x175   : > { %v652_v56 = vmax.f32 %v579_v54, 0.0  ;;  %v782_v60 = vsel %vm706_vm1, %v699_v55, 0.0 }
 0x176   : > { %v623_v57 = vpop.f32.mrf.mxu3 }
 0x177   : > { %v624_v58 = vadd.f32 %v1532_v7, %v623_v57  ;;  %v685_v59 = vmul.f32 %v1538_v10, %v652_v56 }
 0x179   : > { %v667_v61 = vmax.f32 %v624_v58, 0.0  ;;  %v740_v62 = vsel %vm706_vm1, %v685_v59, 0.0 }
 0x17a   : > { %v581_v63 = vpop.f32.mrf.mxu1  ;;  %741 = vadd.xlane.f32.xlu2 %v740_v62  ;;  %783 = vadd.xlane.f32.xlu1 %v782_v60 }
 0x17b   : > { %v582_v0 = vadd.f32 %v1532_v7, %v581_v63  ;;  %v700_v1 = vmul.f32 %v1538_v10, %v667_v61 }
 0x17d   : > { %v653_v2 = vmax.f32 %v582_v0, 0.0  ;;  %v785_v5 = vsel %vm706_vm1, %v700_v1, 0.0 }
 0x17e   : > { %v626_v3 = vpop.f32.mrf.mxu3 }
 0x17f   : > { %v627_v4 = vadd.f32 %v1532_v7, %v626_v3  ;;  %v686_v6 = vmul.f32 %v1538_v10, %v653_v2 }
 0x181   : > { %v668_v8 = vmax.f32 %v627_v4, 0.0  ;;  %v743_v9 = vsel %vm706_vm1, %v686_v6, 0.0 }
 0x182   : > { %v584_v11 = vpop.f32.mrf.mxu1  ;;  %786 = vadd.xlane.f32.xlu2 %v785_v5  ;;  %744 = vadd.xlane.f32.xlu0 %v743_v9 }
 0x183   : > { %v585_v12 = vadd.f32 %v1532_v7, %v584_v11  ;;  %v701_v13 = vmul.f32 %v1538_v10, %v668_v8 }
 0x185   : > { %v654_v14 = vmax.f32 %v585_v12, 0.0  ;;  %v788_v18 = vsel %vm706_vm1, %v701_v13, 0.0 }
 0x186   : > { %v629_v15 = vpop.f32.mrf.mxu3 }
 0x187   : > { %v630_v16 = vadd.f32 %v1532_v7, %v629_v15  ;;  %v687_v17 = vmul.f32 %v1538_v10, %v654_v14 }
 0x189   : > { %v669_v19 = vmax.f32 %v630_v16, 0.0  ;;  %v746_v20 = vsel %vm706_vm1, %v687_v17, 0.0 }
 0x18a   : > { %v587_v21 = vpop.f32.mrf.mxu1  ;;  %747 = vadd.xlane.f32.xlu1 %v746_v20  ;;  %789 = vadd.xlane.f32.xlu0 %v788_v18 }
 0x18b   : > { %v588_v22 = vadd.f32 %v1532_v7, %v587_v21  ;;  %v702_v23 = vmul.f32 %v1538_v10, %v669_v19 }
 0x18d   : > { %v655_v25 = vmax.f32 %v588_v22, 0.0  ;;  %v791_v29 = vsel %vm706_vm1, %v702_v23, 0.0 }
 0x18e   : > { %v632_v26 = vpop.f32.mrf.mxu3 }
 0x18f   : > { %v633_v27 = vadd.f32 %v1532_v7, %v632_v26  ;;  %v688_v28 = vmul.f32 %v1538_v10, %v655_v25 }
 0x191   : > { %v670_v39 = vmax.f32 %v633_v27, 0.0  ;;  %v749_v30 = vsel %vm706_vm1, %v688_v28, 0.0 }
 0x192   : > { %v590_v31 = vpop.f32.mrf.mxu1  ;;  %750 = vadd.xlane.f32.xlu2 %v749_v30  ;;  %792 = vadd.xlane.f32.xlu1 %v791_v29 }
 0x193   : > { %v591_v32 = vadd.f32 %v1532_v7, %v590_v31  ;;  %v703_v33 = vmul.f32 %v1538_v10, %v670_v39 }
 0x195   : > { %v656_v34 = vmax.f32 %v591_v32, 0.0  ;;  %v794_v37 = vsel %vm706_vm1, %v703_v33, 0.0  ;;  %v709_v45 = vpop.xlane.xlu0 %708 }
 0x196   : > { %v635_v35 = vpop.f32.mrf.mxu3  ;;  %v803_v49 = vadd.f32 %v1538_v10, %v709_v45 }
 0x197   : > { %v636_v36 = vadd.f32 %v1532_v7, %v635_v35  ;;  %v689_v38 = vmul.f32 %v1538_v10, %v656_v34 }
 0x199   : > { %v671_v40 = vmax.f32 %v636_v36, 0.0  ;;  %v752_v41 = vsel %vm706_vm1, %v689_v38, 0.0 }
 0x19a   : > { %795 = vadd.xlane.f32.xlu2 %v794_v37  ;;  %753 = vadd.xlane.f32.xlu0 %v752_v41 }
 0x19b   : > { %v704_v42 = vmul.f32 %v1538_v10, %v671_v40 }
 0x19d   : > { %v797_v43 = vsel %vm706_vm1, %v704_v42, 0.0  ;;  %v712_v50 = vpop.xlane.xlu0 %711 }
 0x19e   : > { %v804_v51 = vadd.f32 %v1538_v10, %v712_v50  ;;  %v638_v59 = vpop.f32.mrf.mxu3 }
 0x19f   : > { %v639_v62 = vadd.f32 %v1532_v7, %v638_v59 }
 0x1a1   : > { %v757_v44 = vpop.xlane.xlu1 %756  ;;  %v672_v0 = vmax.f32 %v639_v62, 0.0 }
 0x1a2   : > { %798 = vadd.xlane.f32.xlu0 %v797_v43  ;;  %v819_v46 = vadd.f32 %v1538_v10, %v757_v44 }
 0x1a3   : > { %v705_v2 = vmul.f32 %v1538_v10, %v672_v0 }
 0x1a5   : > { %v800_v4 = vsel %vm706_vm1, %v705_v2, 0.0 }
 0x1a9   : > { %v715_v47 = vpop.xlane.xlu1 %714  ;;  %v760_v48 = vpop.xlane.xlu2 %759 }
 0x1aa   : > { %v820_v55 = vadd.f32 %v1538_v10, %v760_v48  ;;  %v805_v18 = vadd.f32 %v1538_v10, %v715_v47 }
 0x1ab   : > { %917 = vperm.xlu1 %1234, %v819_v46  }
 0x1b1   : > { %v718_v52 = vpop.xlane.xlu1 %717  ;;  %v763_v56 = vpop.xlane.xlu0 %762 }
 0x1b2   : > { %837 = vperm.xlu2 %1232, %v803_v49   ;;  %v806_v54 = vadd.f32 %v1538_v10, %v718_v52  ;;  %v821_v58 = vadd.f32 %v1538_v10, %v763_v56 }
 0x1b5   : > { %v721_v53 = vpop.xlane.xlu2 %720 }
 0x1b6   : > { %842 = vperm.xlu0 %1233, %v804_v51   ;;  %v807_v63 = vadd.f32 %v1538_v10, %v721_v53 }
 0x1b9   : > { %v766_v12 = vpop.xlane.xlu1 %765 }
 0x1ba   : > { %852 = vperm.xlu2 %1232, %v806_v54   ;;  %v822_v22 = vadd.f32 %v1538_v10, %v766_v12 }
 0x1bd   : > { %v724_v57 = vpop.xlane.xlu2 %723 }
 0x1be   : > { %922 = vperm.xlu0 %1233, %v820_v55   ;;  %v808_v28 = vadd.f32 %v1538_v10, %v724_v57 }
 0x1c2   : > { %927 = vperm.xlu2 %1232, %v821_v58  }
 0x1c5   : > { %v769_v60 = vpop.xlane.xlu2 %768  ;;  %v727_v1 = vpop.xlane.xlu0 %726 }
 0x1c6   : > { %v823_v61 = vadd.f32 %v1538_v10, %v769_v60  ;;  %v809_v3 = vadd.f32 %v1538_v10, %v727_v1 }
 0x1c8   : > { %937 = vperm.xlu0 %1233, %v823_v61  }
 0x1ca   : > { %857 = vperm.xlu2 %1232, %v807_v63  }
 0x1cd   : > { %v772_v5 = vpop.xlane.xlu0 %771  ;;  %v730_v16 = vpop.xlane.xlu1 %729 }
 0x1ce   : > { %v824_v7 = vadd.f32 %v1538_v10, %v772_v5  ;;  %v810_v31 = vadd.f32 %v1538_v10, %v730_v16 }
 0x1d2   : > { %867 = vperm.xlu2 %1232, %v809_v3  }
 0x1d5   : > { %v733_v6 = vpop.xlane.xlu2 %732  ;;  %801 = vadd.xlane.f32.xlu1 %v800_v4  ;;  %v775_v21 = vpop.xlane.xlu1 %774 }
 0x1d6   : > { %v811_v8 = vadd.f32 %v1538_v10, %v733_v6  ;;  %v825_v35 = vadd.f32 %v1538_v10, %v775_v21 }
 0x1d8   : > { %877 = vperm.xlu0 %1233, %v811_v8  }
 0x1da   : > { %942 = vperm.xlu2 %1232, %v824_v7  }
 0x1dd   : > { %v778_v9 = vpop.xlane.xlu2 %777  ;;  %v736_v11 = vpop.xlane.xlu0 %735 }
 0x1de   : > { %v826_v13 = vadd.f32 %v1538_v10, %v778_v9  ;;  %v812_v14 = vadd.f32 %v1538_v10, %v736_v11 }
 0x1e0   : > { %952 = vperm.xlu0 %1233, %v826_v13  }
 0x1e2   : > { %882 = vperm.xlu2 %1232, %v812_v14  }
 0x1e5   : > { %v781_v15 = vpop.xlane.xlu0 %780  ;;  %v739_v27 = vpop.xlane.xlu1 %738 }
 0x1e6   : > { %v827_v17 = vadd.f32 %v1538_v10, %v781_v15  ;;  %v813_v41 = vadd.f32 %v1538_v10, %v739_v27 }
 0x1ea   : > { %957 = vperm.xlu2 %1232, %v827_v17  }
 0x1ed   : > { %v742_v19 = vpop.xlane.xlu2 %741  ;;  %v784_v30 = vpop.xlane.xlu1 %783 }
 0x1ee   : > { %v814_v20 = vadd.f32 %v1538_v10, %v742_v19  ;;  %847 = vperm.xlu1 %1234, %v805_v18   ;;  %v828_v46 = vadd.f32 %v1538_v10, %v784_v30 }
 0x1f0   : > { %892 = vperm.xlu0 %1233, %v814_v20  }
 0x1f5   : > { %v787_v23 = vpop.xlane.xlu2 %786  ;;  %v745_v24 = vpop.xlane.xlu0 %744 }
 0x1f6   : > { %v829_v25 = vadd.f32 %v1538_v10, %v787_v23  ;;  %v815_v26 = vadd.f32 %v1538_v10, %v745_v24  ;;  %932 = vperm.xlu1 %1234, %v822_v22  }
 0x1f8   : > { %967 = vperm.xlu0 %1233, %v829_v25   ;;  %897 = vperm.xlu2 %1232, %v815_v26  }
 0x1fd   : > { %v790_v29 = vpop.xlane.xlu0 %789  ;;  %v748_v34 = vpop.xlane.xlu1 %747 }
 0x1fe   : > { %v830_v39 = vadd.f32 %v1538_v10, %v790_v29  ;;  %862 = vperm.xlu1 %1234, %v808_v28   ;;  %v816_v49 = vadd.f32 %v1538_v10, %v748_v34 }
 0x200   : > { %972 = vperm.xlu2 %1232, %v830_v39  }
 0x205   : > { %v751_v32 = vpop.xlane.xlu2 %750  ;;  %v793_v42 = vpop.xlane.xlu1 %792 }
 0x206   : > { %v817_v33 = vadd.f32 %v1538_v10, %v751_v32  ;;  %872 = vperm.xlu1 %1234, %v810_v31   ;;  %v831_v52 = vadd.f32 %v1538_v10, %v793_v42 }
 0x208   : > { %907 = vperm.xlu0 %1233, %v817_v33  }
 0x20d   : > { %v796_v36 = vpop.xlane.xlu2 %795  ;;  %v754_v37 = vpop.xlane.xlu0 %753 }
 0x20e   : > { %v832_v38 = vadd.f32 %v1538_v10, %v796_v36  ;;  %v818_v40 = vadd.f32 %v1538_v10, %v754_v37  ;;  %947 = vperm.xlu1 %1234, %v825_v35  }
 0x210   : > { %982 = vperm.xlu0 %1233, %v832_v38   ;;  %912 = vperm.xlu2 %1232, %v818_v40  }
 0x215   : > { %v838_v43 = vpop.permute.xlu2 %837  ;;  %v799_v44 = vpop.xlane.xlu0 %798 }
 0x216   : > { %995 = vst [vmem:[%s1667_s3] sm:$0xff] %v838_v43  ;;  %v833_v45 = vadd.f32 %v1538_v10, %v799_v44  ;;  %887 = vperm.xlu1 %1234, %v813_v41  }
 0x218   : > { %987 = vperm.xlu2 %1232, %v833_v45  }
 0x21d   : > { %v918_v47 = vpop.permute.xlu1 %917  ;;  %v853_v48 = vpop.permute.xlu2 %852 }
 0x21e   : > { %1011 = vst [vmem:[%s1667_s3 + $0x80] sm:$0xff] %v918_v47  ;;  %962 = vperm.xlu1 %1234, %v828_v46  }
 0x21f   : > { %998 = vst [vmem:[%s1667_s3 + $0x18] sm:$0xff] %v853_v48 }
 0x225   : > { %v928_v50 = vpop.permute.xlu2 %927 }
 0x226   : > { %1013 = vst [vmem:[%s1667_s3 + $0x90] sm:$0xff] %v928_v50  ;;  %902 = vperm.xlu1 %1234, %v816_v49  }
 0x228   : > { %v843_v51 = vpop.permute.xlu0 %842 }
 0x229   : > { %996 = vst [vmem:[%s1667_s3 + $0x8] sm:$0xff] %v843_v51 }
 0x22d   : > { %v858_v53 = vpop.permute.xlu2 %857 }
 0x22e   : > { %999 = vst [vmem:[%s1667_s3 + $0x20] sm:$0xff] %v858_v53  ;;  %977 = vperm.xlu1 %1234, %v831_v52  }
 0x230   : > { %v923_v54 = vpop.permute.xlu0 %922 }
 0x231   : > { %1012 = vst [vmem:[%s1667_s3 + $0x88] sm:$0xff] %v923_v54 }
 0x235   : > { %v868_v55 = vpop.permute.xlu2 %867 }
 0x236   : > { %1001 = vst [vmem:[%s1667_s3 + $0x30] sm:$0xff] %v868_v55 }
 0x23a   : > { %v938_v56 = vpop.permute.xlu0 %937 }
 0x23b   : > { %1015 = vst [vmem:[%s1667_s3 + $0xa0] sm:$0xff] %v938_v56 }
 0x23d   : > { %v943_v57 = vpop.permute.xlu2 %942 }
 0x23e   : > { %1016 = vst [vmem:[%s1667_s3 + $0xa8] sm:$0xff] %v943_v57 }
 0x245   : > { %v883_v58 = vpop.permute.xlu2 %882 }
 0x246   : > { %1004 = vst [vmem:[%s1667_s3 + $0x48] sm:$0xff] %v883_v58 }
 0x248   : > { %v802_v59 = vpop.xlane.xlu1 %801 }
 0x249   : > { %v834_v60 = vadd.f32 %v1538_v10, %v802_v59 }
 0x24a   : > { %v878_v61 = vpop.permute.xlu0 %877 }
 0x24b   : > { %1003 = vst [vmem:[%s1667_s3 + $0x40] sm:$0xff] %v878_v61  ;;  %992 = vperm.xlu1 %1234, %v834_v60  }
 0x24d   : > { %v958_v62 = vpop.permute.xlu2 %957 }
 0x24e   : > { %1019 = vst [vmem:[%s1667_s3 + $0xc0] sm:$0xff] %v958_v62 }
 0x252   : > { %v953_v63 = vpop.permute.xlu0 %952 }
 0x253   : > { %1018 = vst [vmem:[%s1667_s3 + $0xb8] sm:$0xff] %v953_v63 }
 0x255   : > { %v898_v0 = vpop.permute.xlu2 %897 }
 0x256   : > { %1007 = vst [vmem:[%s1667_s3 + $0x60] sm:$0xff] %v898_v0 }
 0x25d   : > { %v973_v1 = vpop.permute.xlu2 %972 }
 0x25e   : > { %1022 = vst [vmem:[%s1667_s3 + $0xd8] sm:$0xff] %v973_v1 }
 0x260   : > { %v848_v2 = vpop.permute.xlu1 %847 }
 0x261   : > { %997 = vst [vmem:[%s1667_s3 + $0x10] sm:$0xff] %v848_v2 }
 0x262   : > { %v893_v10 = vpop.permute.xlu0 %892 }
 0x263   : > { %1006 = vst [vmem:[%s1667_s3 + $0x58] sm:$0xff] %v893_v10 }
 0x268   : > { %v933_v3 = vpop.permute.xlu1 %932 }
 0x269   : > { %1014 = vst [vmem:[%s1667_s3 + $0x98] sm:$0xff] %v933_v3 }
 0x26a   : > { %v913_v4 = vpop.permute.xlu2 %912  ;;  %v968_v5 = vpop.permute.xlu0 %967 }
 0x26b   : > { %1010 = vst [vmem:[%s1667_s3 + $0x78] sm:$0xff] %v913_v4 }
 0x26c   : > { %1021 = vst [vmem:[%s1667_s3 + $0xd0] sm:$0xff] %v968_v5 }
 0x270   : > { %v863_v6 = vpop.permute.xlu1 %862 }
 0x271   : > { %1000 = vst [vmem:[%s1667_s3 + $0x28] sm:$0xff] %v863_v6 }
 0x272   : > { %v988_v8 = vpop.permute.xlu2 %987 }
 0x273   : > { %1025 = vst [vmem:[%s1667_s3 + $0xf0] sm:$0xff] %v988_v8 }
 0x278   : > { %v873_v7 = vpop.permute.xlu1 %872 }
 0x279   : > { %1002 = vst [vmem:[%s1667_s3 + $0x38] sm:$0xff] %v873_v7 }
 0x27a   : > { %v908_v9 = vpop.permute.xlu0 %907 }
 0x27b   : > { %1009 = vst [vmem:[%s1667_s3 + $0x70] sm:$0xff] %v908_v9 }
 0x280   : > { %v948_v11 = vpop.permute.xlu1 %947 }
 0x281   : > { %1017 = vst [vmem:[%s1667_s3 + $0xb0] sm:$0xff] %v948_v11 }
 0x282   : > { %v983_v12 = vpop.permute.xlu0 %982 }
 0x283   : > { %1024 = vst [vmem:[%s1667_s3 + $0xe8] sm:$0xff] %v983_v12 }
 0x288   : > { %v888_v13 = vpop.permute.xlu1 %887 }
 0x289   : > { %1005 = vst [vmem:[%s1667_s3 + $0x50] sm:$0xff] %v888_v13 }
 0x290   : > { %v963_v14 = vpop.permute.xlu1 %962 }
 0x291   : > { %1020 = vst [vmem:[%s1667_s3 + $0xc8] sm:$0xff] %v963_v14 }
 0x298   : > { %v903_v15 = vpop.permute.xlu1 %902 }
 0x299   : > { %1008 = vst [vmem:[%s1667_s3 + $0x68] sm:$0xff] %v903_v15 }
 0x2a0   : > { %v978_v16 = vpop.permute.xlu1 %977 }
 0x2a1   : > { %1023 = vst [vmem:[%s1667_s3 + $0xe0] sm:$0xff] %v978_v16 }
 0x2bd   : > { %v993_v17 = vpop.permute.xlu1 %992 }
 0x2be   : > { %1026 = vst [vmem:[%s1667_s3 + $0xf8] sm:$0xff] %v993_v17 }
 0x2bf   : > { %1265 = shalt.err (!%p1262_p3)
}
 0x2c0   : > { %s1303_s26 = smov 128   ;;  %s1304_s27 = smov 8  }
 0x2c1   : > { %1190 = dma.vmem_to_hbm [thread:$0]  (%p1358_p5), %s1041_s8, 4096, %s1043_s14, %s1028_s16, %s1303_s26, %s1303_s26, %s1304_s27  }
 0x2c2 PF: > { %p1196_p4 = scmp.ge.s32.totalorder %s1300_s12, 2  ;;  %s1057_s28 = sand.u32 1, %s1288_s9  }
 0x2c3   : > { %s1058_s29 = scalar_lea.sflag [#allocation3], %s1057_s28 }
 0x2c4   : > { %p1193_p7 = pnand %p1196_p4, %p1362_p6 }
 0x2c6   : > { %p1194_p8 = pneg %p1193_p7 }
 0x2c8   : > { %1283 = dma.done.wait (%p1194_p8), %s1058_s29, 4096  }
 0x2c9   : > { %1285 = vsyncadd (%p1194_p8), %s1058_s29, 4294963200  ;;  %p12_p9 = scmp.ge.s32.totalorder %s1345_s15, 4   ;;  %s1745_s9 = smov %s1292_s10 }
 0x2ca   : > { %s1746_s10 = smov %s1296_s11  ;;  %s1747_s11 = smov %s1356_s18 }
 0x2cb   : > { %s1748_s12 = smov %s1345_s15  ;;  %14 = sbr.rel (!%p12_p9) target bundleno = 3 (0x3), region = 63 }
 0x2d0   :  { %1064 = vsyncpa [#allocation3], 1 }
 0x2d1   :  { %1066 = vsyncpa [#allocation3 + $0x1], 1 }

</bundles_post_ra>
